<compile_context>
chip_gen: v5e
topology: v5e:2x2
jax: 0.10.0
libtpu: 0.0.40
codegen_flags: <defaults>
</compile_context>

<pallas_src>
import math
import jax
import jax.numpy as jnp
from jax.experimental import pallas as pl
from jax.experimental.pallas import tpu as pltpu


def _round_up(x, m):
    return -(-x // m) * m


def _default_tile_q():
    # 256 rows feed the 2x256 MXU of v6e/v7x; v5e's 128-wide MXU prefers 128.
    try:
        kind = jax.devices()[0].device_kind.lower()
        if "v5" in kind:
            return 128
    except Exception:
        pass
    return 256


# ----------------------------------------------------------------------------
# Kernel 1: tiled linear projection  y = (x @ W + b) [* keep]
# (memory-bound; kept in f32 so the projected activations don't drift)
# ----------------------------------------------------------------------------
def _linear_kernel(x_ref, w_ref, b_ref, o_ref):
    acc = jnp.dot(x_ref[...], w_ref[...], preferred_element_type=jnp.float32)
    o_ref[...] = (acc + b_ref[...]).astype(o_ref.dtype)


def _masked_linear_kernel(x_ref, w_ref, b_ref, keep_ref, o_ref):
    acc = jnp.dot(x_ref[...], w_ref[...], preferred_element_type=jnp.float32)
    o_ref[...] = ((acc + b_ref[...]) * keep_ref[...]).astype(o_ref.dtype)


def linear_pallas(x, w, b, keep=None, *, tile_m=1024):
    """x: (M, K) f32, w: (K, Dout), b: (Dout,), keep: optional (M, 1) multiplier."""
    M, K = x.shape
    Dout = w.shape[1]
    tm = min(tile_m, _round_up(M, 8))          # small M -> single full block
    n_tiles = -(-M // tm)
    Mp = n_tiles * tm
    if Mp != M:
        x = jnp.pad(x, ((0, Mp - M), (0, 0)))
        if keep is not None:
            keep = jnp.pad(keep, ((0, Mp - M), (0, 0)))
    b2 = b.reshape(1, Dout).astype(jnp.float32)

    x_spec = pl.BlockSpec((tm, K), lambda i: (i, 0))
    w_spec = pl.BlockSpec((K, Dout), lambda i: (0, 0))     # resident across tiles
    b_spec = pl.BlockSpec((1, Dout), lambda i: (0, 0))     # resident across tiles
    o_spec = pl.BlockSpec((tm, Dout), lambda i: (i, 0))
    cparams = pltpu.CompilerParams(dimension_semantics=("parallel",))

    if keep is None:
        out = pl.pallas_call(
            _linear_kernel,
            out_shape=jax.ShapeDtypeStruct((Mp, Dout), jnp.float32),
            grid=(n_tiles,),
            in_specs=[x_spec, w_spec, b_spec],
            out_specs=o_spec,
            compiler_params=cparams,
        )(x, w, b2)
    else:
        k_spec = pl.BlockSpec((tm, 1), lambda i: (i, 0))
        out = pl.pallas_call(
            _masked_linear_kernel,
            out_shape=jax.ShapeDtypeStruct((Mp, Dout), jnp.float32),
            grid=(n_tiles,),
            in_specs=[x_spec, w_spec, b_spec, k_spec],
            out_specs=o_spec,
            compiler_params=cparams,
        )(x, w, b2, keep)
    return out[:M] if Mp != M else out


# ----------------------------------------------------------------------------
# Kernel 2: deformable-attention core (+ per-head softmax over L*P)
# grid = (N, Lq_tiles); value (bf16) stays resident across query tiles; output
# is written lane-dense per head into (1, tile_q, d_model).
# ----------------------------------------------------------------------------
def make_deform_core(N, Lq_pad, d_model, H, L, P, temporal_lens, level_starts,
                     tile_q, t_chunk=256):
    Dh = d_model // H
    LP = L * P
    HLP = H * LP
    Len_v = int(sum(temporal_lens))
    num_q = Lq_pad // tile_q
    in_dim = 2 * HLP + L         # [offsets | attn logits | pre-scaled refs]

    def kernel(value_ref, proj_ref, out_ref):
        v = value_ref[0]                        # (Len_v, d_model)   bf16
        proj = proj_ref[0]                      # (tile_q, in_dim)   f32

        offs = proj[:, :HLP]                    # sampling offsets
        logits = proj[:, HLP:2 * HLP]           # attention logits

        # ---- per-head softmax over L*P, lane-dense --------------------------
        # one exp over the whole slab (single EUP pass); per-head denominators
        # via a block-indicator segment-sum on the MXU (unit with slack).
        m = jnp.max(logits, axis=-1, keepdims=True)        # row max (softmax-invariant)
        e = jnp.exp(logits - m)                             # (tq, HLP)
        lane_head = jax.lax.broadcasted_iota(jnp.int32, (HLP, H), 0) // LP
        col_head = jax.lax.broadcasted_iota(jnp.int32, (HLP, H), 1)
        seg_mat = (lane_head == col_head).astype(jnp.float32)          # (HLP, H)
        row_head = jax.lax.broadcasted_iota(jnp.int32, (H, HLP), 0)
        lane_head_t = jax.lax.broadcasted_iota(jnp.int32, (H, HLP), 1) // LP
        seg_mat_t = (row_head == lane_head_t).astype(jnp.float32)      # (H, HLP)
        denom = jnp.dot(e, seg_mat, preferred_element_type=jnp.float32)      # (tq, H)
        inv = pl.reciprocal(jnp.maximum(denom, 1e-30), approx=True)          # (tq, H)
        inv_full = jnp.dot(inv, seg_mat_t, preferred_element_type=jnp.float32)  # (tq, HLP)
        attn = e * inv_full                                                   # (tq, HLP)

        # ---- hoisted level-invariant tent bases ------------------------------
        # base[l][chunk] = ref_l * T_l - 0.5 - t   (computed once, reused H*P times)
        base_chunks = []
        chunk_meta = []
        for l in range(L):
            T_l = int(temporal_lens[l])
            rl = proj[:, 2 * HLP + l:2 * HLP + l + 1]       # pre-scaled ref, (tq, 1)
            bl, ml = [], []
            for c0 in range(0, T_l, t_chunk):
                cs = min(t_chunk, T_l - c0)
                t_idx = (jax.lax.broadcasted_iota(jnp.float32, (tile_q, cs), 1)
                         + float(c0))
                bl.append(rl - t_idx)                        # (tq, cs)
                ml.append((c0, cs))
            base_chunks.append(bl)
            chunk_meta.append(ml)

        # ---- per head: time-chunked tent densification + MXU accumulation ----
        for h in range(H):                                   # static, small
            acc_h = jnp.zeros((tile_q, Dh), jnp.float32)
            for l in range(L):
                start = int(level_starts[l])
                for ci, (c0, cs) in enumerate(chunk_meta[l]):
                    base = base_chunks[l][ci]                # (tq, cs)
                    a_chunk = jnp.zeros((tile_q, cs), jnp.float32)
                    for p in range(P):
                        c = (h * L + l) * P + p
                        w = jnp.maximum(0.0, 1.0 - jnp.abs(base + offs[:, c:c + 1]))
                        a_chunk = a_chunk + attn[:, c:c + 1] * w
                    v_blk = v[start + c0:start + c0 + cs, h * Dh:(h + 1) * Dh]
                    acc_h = acc_h + jnp.dot(a_chunk.astype(jnp.bfloat16), v_blk,
                                            preferred_element_type=jnp.float32)
            # one lane-range store per head; no concat, no H live temporaries
            out_ref[0, :, h * Dh:(h + 1) * Dh] = acc_h.astype(out_ref.dtype)

    def run(value_bf16, proj_full):
        cost = pl.CostEstimate(
            flops=int(2 * N * num_q * H * Len_v * tile_q * (2 * P + Dh)),
            transcendentals=int(N * Lq_pad * HLP),
            bytes_accessed=int(value_bf16.size * 2 + proj_full.size * 4
                               + N * Lq_pad * d_model * 4))
        # v7x guard: value block is bf16 and re-DMA'd only when n changes; size the
        # scoped VMEM explicitly (stays at the 32 MiB default for small problems).
        vmem_need = (2 * Len_v * d_model * 2          # double-buffered bf16 value
                     + 2 * tile_q * in_dim * 4        # proj tiles
                     + 2 * tile_q * d_model * 4       # out tiles
                     + 2 * tile_q * Len_v * 4         # hoisted bases + A slack
                     + (2 << 20))
        vmem_limit = int(max(32 * 1024 * 1024, min(vmem_need, 64 * 1024 * 1024)))
        return pl.pallas_call(
            kernel,
            out_shape=jax.ShapeDtypeStruct((N, Lq_pad, d_model), jnp.float32),
            grid=(N, num_q),
            in_specs=[
                # depends only on n -> value block re-used (no re-DMA) across q tiles
                pl.BlockSpec((1, Len_v, d_model), lambda n, q: (n, 0, 0)),
                pl.BlockSpec((1, tile_q, in_dim), lambda n, q: (n, q, 0)),
            ],
            out_specs=pl.BlockSpec((1, tile_q, d_model), lambda n, q: (n, q, 0)),
            compiler_params=pltpu.CompilerParams(
                dimension_semantics=("parallel", "parallel"),
                vmem_limit_bytes=vmem_limit),
            cost_estimate=cost,
        )(value_bf16, proj_full)

    return run


# ----------------------------------------------------------------------------
# Parameter construction (deterministic, mirrors DeformAttn.__init__ shapes)
# ----------------------------------------------------------------------------
def make_params(key, d_model, n_heads, n_levels, n_points):
    H, L, P = n_heads, n_levels, n_points
    k1, k2, k3, k4 = jax.random.split(key, 4)

    w_value = jax.random.normal(k1, (d_model, d_model), jnp.float32) / math.sqrt(d_model)
    b_value = jnp.zeros((d_model,), jnp.float32)

    # sampling_offsets bias: grid init of _reset_parameters (boundary_aware=False)
    grid = jnp.linspace(-float(P), float(P), H * P + 1)
    mid = H * P // 2
    grid = jnp.concatenate([grid[:mid], grid[mid + 1:]])            # (H*P,)
    grid = jnp.tile(grid.reshape(H, 1, P, 1), (1, L, 1, 1))         # (H, L, P, 1)
    b_off = grid.reshape(-1).astype(jnp.float32)                    # (H*L*P,)
    # small deterministic weights (reference zero-inits; non-zero so the kernel
    # path is input dependent)
    w_off = 0.01 * jax.random.normal(k2, (d_model, H * L * P), jnp.float32)
    w_attn = 0.01 * jax.random.normal(k3, (d_model, H * L * P), jnp.float32)
    b_attn = 0.01 * jax.random.normal(k4, (H * L * P,), jnp.float32)

    # fused [offsets | attention-logits] projection used by the Pallas path
    w_qa = jnp.concatenate([w_off, w_attn], axis=1)                 # (d_model, 2*HLP)
    b_qa = jnp.concatenate([b_off, b_attn], axis=0)                 # (2*HLP,)

    # output_proj exists in the module but is NOT applied on the fp32 path.
    return dict(w_value=w_value, b_value=b_value,
                w_off=w_off, b_off=b_off, w_attn=w_attn, b_attn=b_attn,
                w_qa=w_qa, b_qa=b_qa)


# ----------------------------------------------------------------------------
# Forward wrapper == DeformAttn.forward (fp32 path)
# ----------------------------------------------------------------------------
def deform_attn_forward(params, query, reference_points, input_flatten,
                        input_temporal_lens, input_level_start_index,
                        input_padding_mask=None,
                        *, d_model, n_heads, n_levels, n_points,
                        tile_q=None, t_chunk=256):
    H, L, P = n_heads, n_levels, n_points
    HLP = H * L * P
    N, Lq, _ = query.shape
    assert d_model % H == 0

    temporal_lens = tuple(int(t) for t in input_temporal_lens[:L])
    level_starts = tuple(int(s) for s in input_level_start_index[:L])
    cum = 0
    for l in range(L):
        assert level_starts[l] == cum, "levels must be stored contiguously"
        cum += temporal_lens[l]
    Len_values = cum

    # ---- value projection + padding-mask zeroing (fused, tiled, pipelined) ----
    x_val = input_flatten[:, :Len_values].reshape(N * Len_values, d_model)
    keep = None
    if input_padding_mask is not None:
        keep = (1.0 - input_padding_mask[:, :Len_values].astype(jnp.float32)
                ).reshape(N * Len_values, 1)
    value = linear_pallas(x_val, params["w_value"], params["b_value"], keep)
    # bf16 value: native MXU rate, half the resident VMEM block / DMA; the core
    # accumulates in f32.
    value = value.reshape(N, Len_values, d_model).astype(jnp.bfloat16)

    # ---- fused sampling-offset + attention-logit projection (one query pass) ----
    q2d = query.reshape(N * Lq, d_model)
    proj = linear_pallas(q2d, params["w_qa"], params["b_qa"]).reshape(N, Lq, 2 * HLP)

    # ---- fold pre-scaled reference points into the query-side slab ----
    # sampling loc = ref + off/T_l ; pixel coord = loc*T_l - 0.5 = (ref*T_l - 0.5) + off
    assert reference_points.shape[-1] == 1
    ref = reference_points[..., 0][:, :, :L]                          # (N, Lq, L)
    tlens = jnp.asarray(temporal_lens, jnp.float32)
    ref_scaled = ref * tlens[None, None, :] - 0.5
    proj_full = jnp.concatenate([proj, ref_scaled], axis=-1)          # (N, Lq, 2*HLP+L)

    # ---- query tiling: pad Lq (never one huge fallback block) ----
    if tile_q is None:
        tile_q = _default_tile_q()
    Lq_pad = _round_up(Lq, 8)
    if Lq_pad <= tile_q:
        tile_q = Lq_pad
    else:
        Lq_pad = _round_up(Lq, tile_q)
    if Lq_pad != Lq:
        proj_full = jnp.pad(proj_full, ((0, 0), (0, Lq_pad - Lq), (0, 0)))

    # ---- deformable attention core ----
    core = make_deform_core(N, Lq_pad, d_model, H, L, P,
                            temporal_lens, level_starts, tile_q, t_chunk)
    out = core(value, proj_full)                                      # (N, Lq_pad, d_model)
    if Lq_pad != Lq:
        out = out[:, :Lq]

    # fp32 path of the reference module: no output_proj, aux return is None.
    return out, None


# ----------------------------------------------------------------------------
# Pure-JAX reference of the same fp32 forward (for a numerical sanity check)
# ----------------------------------------------------------------------------
def reference_forward(params, query, reference_points, input_flatten,
                      temporal_lens, level_starts, padding_mask,
                      *, d_model, n_heads, n_levels, n_points):
    H, L, P = n_heads, n_levels, n_points
    Dh = d_model // H
    N, Lq, _ = query.shape
    Len_v = int(sum(temporal_lens))

    value = input_flatten[:, :Len_v] @ params["w_value"] + params["b_value"]
    if padding_mask is not None:
        value = jnp.where(padding_mask[:, :Len_v, None], 0.0, value)
    value = value.reshape(N, Len_v, H, Dh)

    off = (query @ params["w_off"] + params["b_off"]).reshape(N, Lq, H, L, P)
    logits = (query @ params["w_attn"] + params["b_attn"]).reshape(N, Lq, H, L * P)
    attn = jax.nn.softmax(logits, axis=-1).reshape(N, Lq, H, L, P)
    ref = reference_points[..., 0]                           # (N, Lq, L)

    out = jnp.zeros((N, Lq, H, Dh), jnp.float32)
    for l in range(L):
        T_l = int(temporal_lens[l]); start = int(level_starts[l])
        v_l = value[:, start:start + T_l]                    # (N, T_l, H, Dh)
        ref_l = ref[:, :, l][:, :, None, None]               # (N, Lq, 1, 1)
        pos = ref_l * T_l + off[:, :, :, l, :] - 0.5         # (N, Lq, H, P)
        t = jnp.arange(T_l, dtype=jnp.float32)
        w = jnp.maximum(0.0, 1.0 - jnp.abs(pos[..., None] - t))   # (N, Lq, H, P, T_l)
        out = out + jnp.einsum('nqhpt,nqhp,nthd->nqhd', w, attn[:, :, :, l, :], v_l)
    return out.reshape(N, Lq, d_model)


# ----------------------------------------------------------------------------
if __name__ == "__main__":
    key = jax.random.PRNGKey(0)

    # small shapes consistent with the module
    N, Lq = 2, 8
    d_model, n_heads, n_levels, n_points = 32, 8, 2, 4
    temporal_lens = jnp.array([16, 8], dtype=jnp.int32)
    level_start_index = jnp.array([0, 16], dtype=jnp.int32)
    Len_in = int(temporal_lens.sum())

    kq, kf, kr, _ = jax.random.split(key, 4)
    query = jax.random.normal(kq, (N, Lq, d_model), jnp.float32)
    input_flatten = jax.random.normal(kf, (N, Len_in, d_model), jnp.float32)
    reference_points = jax.random.uniform(kr, (N, Lq, n_levels, 1), jnp.float32)
    # a couple of padded positions at the end of the flattened sequence
    padding_mask = jnp.arange(Len_in)[None, :] >= (Len_in - 2)
    padding_mask = jnp.broadcast_to(padding_mask, (N, Len_in))

    params = make_params(jax.random.PRNGKey(42), d_model, n_heads, n_levels, n_points)

    out, aux = deform_attn_forward(
        params, query, reference_points, input_flatten,
        temporal_lens, level_start_index, padding_mask,
        d_model=d_model, n_heads=n_heads, n_levels=n_levels, n_points=n_points)
    out = jax.block_until_ready(out)
    assert out.shape == (N, Lq, d_model)
    assert aux is None

    ref_out = reference_forward(
        params, query, reference_points, input_flatten,
        tuple(int(t) for t in temporal_lens),
        tuple(int(s) for s in level_start_index),
        padding_mask,
        d_model=d_model, n_heads=n_heads, n_levels=n_levels, n_points=n_points)
    err = float(jnp.max(jnp.abs(out - ref_out)))
    # bf16 MXU operands with f32 accumulation + approx reciprocal -> slightly
    # looser tolerance than a pure-f32 comparison.
    assert jnp.allclose(out, ref_out, atol=3e-2, rtol=3e-2), err

    print("KERNEL_OK")
</pallas_src>

<mosaic_0001>
module attributes {stable_mosaic.version = 11 : i64} {
  func.func @_masked_linear_kernel(%arg0: i32, %arg1: memref<48x32xf32, #tpu.memory_space<vmem>>, %arg2: memref<32x32xf32, #tpu.memory_space<vmem>>, %arg3: memref<1x32xf32, #tpu.memory_space<vmem>>, %arg4: memref<48x1xf32, #tpu.memory_space<vmem>>, %arg5: memref<48x32xf32, #tpu.memory_space<vmem>>) attributes {dimension_semantics = [#tpu.dimension_semantics<parallel>], iteration_bounds = array<i64: 1>, scalar_prefetch = 0 : i64, scratch_operands = 0 : i64, tpu.core_type = #tpu.core_type<tc>, window_params = [{transform_indices = @transform_0, window_bounds = array<i64: 48, 32>}, {pipeline_mode = #tpu.pipeline_mode<synchronous>, transform_indices = @transform_1, window_bounds = array<i64: 32, 32>}, {pipeline_mode = #tpu.pipeline_mode<synchronous>, transform_indices = @transform_2, window_bounds = array<i64: 1, 32>}, {transform_indices = @transform_3, window_bounds = array<i64: 48, 1>}, {transform_indices = @transform_4, window_bounds = array<i64: 48, 32>}]} {
    %c0 = arith.constant 0 : index
    %c0_0 = arith.constant 0 : index
    %0 = vector.load %arg1[%c0, %c0_0] : memref<48x32xf32, #tpu.memory_space<vmem>>, vector<48x32xf32>
    %c0_1 = arith.constant 0 : index
    %c0_2 = arith.constant 0 : index
    %1 = vector.load %arg2[%c0_1, %c0_2] : memref<32x32xf32, #tpu.memory_space<vmem>>, vector<32x32xf32>
    %cst = arith.constant dense<0.000000e+00> : vector<48x32xf32>
    %2 = tpu.matmul %0, %1, %cst {dimension_numbers = #tpu.dot_dimension_numbers<[1], [0], [0], [1], [0, 0, 1, 1], [], []>} : vector<48x32xf32>, vector<32x32xf32>, vector<48x32xf32> -> vector<48x32xf32>
    %c0_3 = arith.constant 0 : index
    %c0_4 = arith.constant 0 : index
    %3 = vector.load %arg3[%c0_3, %c0_4] : memref<1x32xf32, #tpu.memory_space<vmem>>, vector<1x32xf32>
    %4 = vector.broadcast %3 : vector<1x32xf32> to vector<48x32xf32>
    %5 = arith.addf %2, %4 : vector<48x32xf32>
    %c0_5 = arith.constant 0 : index
    %c0_6 = arith.constant 0 : index
    %6 = vector.load %arg4[%c0_5, %c0_6] : memref<48x1xf32, #tpu.memory_space<vmem>>, vector<48x1xf32>
    %7 = vector.broadcast %6 : vector<48x1xf32> to vector<48x32xf32>
    %8 = arith.mulf %5, %7 : vector<48x32xf32>
    %c0_7 = arith.constant 0 : index
    %c0_8 = arith.constant 0 : index
    %9 = vector.load %arg5[%c0_7, %c0_8] : memref<48x32xf32, #tpu.memory_space<vmem>>, vector<48x32xf32>
    tpu.vector_store %arg5[%c0_7, %c0_8], %8 {strides = array<i32>} : memref<48x32xf32, #tpu.memory_space<vmem>>, vector<48x32xf32>,
    return
  }
  func.func @transform_0(%arg0: i32) -> (i32, i32) {
    %c0_i32 = arith.constant 0 : i32
    %c0_i32_0 = arith.constant 0 : i32
    return %arg0, %c0_i32 : i32, i32
  }
  func.func @transform_1(%arg0: i32) -> (i32, i32) {
    %c0_i32 = arith.constant 0 : i32
    %c0_i32_0 = arith.constant 0 : i32
    %c0_i32_1 = arith.constant 0 : i32
    return %c0_i32, %c0_i32_0 : i32, i32
  }
  func.func @transform_2(%arg0: i32) -> (i32, i32) {
    %c0_i32 = arith.constant 0 : i32
    %c0_i32_0 = arith.constant 0 : i32
    %c0_i32_1 = arith.constant 0 : i32
    return %c0_i32, %c0_i32_0 : i32, i32
  }
  func.func @transform_3(%arg0: i32) -> (i32, i32) {
    %c0_i32 = arith.constant 0 : i32
    %c0_i32_0 = arith.constant 0 : i32
    return %arg0, %c0_i32 : i32, i32
  }
  func.func @transform_4(%arg0: i32) -> (i32, i32) {
    %c0_i32 = arith.constant 0 : i32
    %c0_i32_0 = arith.constant 0 : i32
    return %arg0, %c0_i32 : i32, i32
  }
}

</mosaic_0001>

<bundles_post_ra>
// kernel: tpu_custom_call.1
= control target key start
LH: loop header
LB: loop body
LE: loop exit
PB: predicated region body
PF: predicated region fallthrough
CT: control target
= control target key end

     0   :  { %v160_v2 = vmov 0   ;;  %vm31_vm0 = vcmask 261120   ;;  %s267_s1 = inlined_call_operand.vmem [shape: f32[32,32], index: 1, kind: input, shape index: {}]   ;;  %s268_s0 = inlined_call_operand.vmem [shape: f32[48,32], index: 0, kind: input, shape index: {}]   ;;  %s269_s3 = inlined_call_operand.vmem [shape: f32[48,1], index: 3, kind: input, shape index: {}]   ;;  %s270_s2 = inlined_call_operand.vmem [shape: f32[1,32], index: 2, kind: input, shape index: {}]   ;;  %s271_s4 = inlined_call_operand.vmem [shape: f32[48,32], index: 4, kind: output, shape index: {}]  }
   0x1   :  { %v26_v0 = vld [vmem:[%s267_s1 + $0x18] sm:$0xff]  ;;  %v25_v1 = vld [vmem:[%s267_s1 + $0x10] sm:$0xff]  ;;  %157 = vset.pattern.permute.xlu1 %v160_v2  ;;  %156 = vset.pattern.permute.xlu0 %v160_v2  ;;  %v24_v3 = vld [vmem:[%s267_s1 + $0x8] sm:$0xff] }
   0x2   :  { %143 = vmatpush.msra.mxu1 %v26_v0  ;;  %144 = vmatpush.msra.mxu2 %v26_v0  ;;  %v23_v4 = vld [vmem:[%s267_s1] sm:$0xff]  ;;  %v18_v5 = vld [vmem:[%s268_s0 + $0x8] sm:$0xff]  ;;  %v20_v6 = vld [vmem:[%s268_s0 + $0x18] sm:$0xff] }
   0x3   :  { %145 = vmatpush.msra.mxu3 %v26_v0  ;;  %62 = vmatpush.msra.mxu0 %v26_v0  ;;  %v21_v7 = vld [vmem:[%s268_s0 + $0x20] sm:$0xff]  ;;  %v87_v8 = vld [vmem:[%s269_s3 + $0x10] sm:$0xff]  ;;  %v22_v13 = vld [vmem:[%s268_s0 + $0x28] sm:$0xff] }
   0x4   :  { %146 = vmatpush.msra.mxu1 %v25_v1  ;;  %147 = vmatpush.msra.mxu2 %v25_v1  ;;  %v17_v9 = vld [vmem:[%s268_s0] sm:$0xff]  ;;  %v19_v12 = vld [vmem:[%s268_s0 + $0x10] sm:$0xff]  ;;  %v88_v14 = vld [vmem:[%s269_s3 + $0x18] sm:$0xff] }
   0x5   :  { %148 = vmatpush.msra.mxu3 %v25_v1  ;;  %63 = vmatpush.msra.mxu0 %v25_v1  ;;  %v85_v10 = vld [vmem:[%s269_s3] sm:$0xff]  ;;  %v86_v15 = vld [vmem:[%s269_s3 + $0x8] sm:$0xff] }
   0x6   :  { %149 = vmatpush.msra.mxu1 %v24_v3  ;;  %150 = vmatpush.msra.mxu2 %v24_v3  ;;  %v89_v11 = vld [vmem:[%s269_s3 + $0x20] sm:$0xff]  ;;  %v90_v16 = vld [vmem:[%s269_s3 + $0x28] sm:$0xff] }
   0x7   :  { %151 = vmatpush.msra.mxu3 %v24_v3  ;;  %64 = vmatpush.msra.mxu0 %v24_v3  ;;  %v159_v19 = vld [vmem:[%s270_s2] ss:$0 sm:$0xff] }
   0x8   :  { %152 = vmatpush.msra.mxu1 %v23_v4  ;;  %153 = vmatpush.msra.mxu2 %v23_v4 }
   0x9   :  { %154 = vmatpush.msra.mxu3 %v23_v4  ;;  %138 = vmatmul.msk.f32.vlgmr.msra.gmra.mxu1 %vm31_vm0, %v18_v5 }
   0xa   :  { %140 = vmatmul.msk.f32.vlgmr.msra.gmra.mxu2 %vm31_vm0, %v20_v6  ;;  %141 = vmatmul.msk.f32.vlgmr.msra.gmra.mxu3 %vm31_vm0, %v21_v7 }
   0xb   :  { %65 = vmatpush.msra.mxu0 %v23_v4  ;;  %103 = vperm.xlu1 %157, %v87_v8  }
   0xc   :  { %137 = vmatmul.msk.f32.vlgmr.msra.gmra.mxu0 %vm31_vm0, %v17_v9  ;;  %93 = vperm.xlu0 %156, %v85_v10  }
   0xd   :  { %158 = vset.pattern.permute.xlu2 %v160_v2 }
   0xe   :  { %113 = vperm.xlu2 %158, %v89_v11  }
  0x11   :  { %139 = vmatmul.msk.f32.gmra.mxu1 %vm31_vm0, %v19_v12 }
  0x12   :  { %142 = vmatmul.msk.f32.gmra.mxu3 %vm31_vm0, %v22_v13 }
  0x13   :  { %108 = vperm.xlu1 %157, %v88_v14  }
  0x14   :  { %98 = vperm.xlu0 %156, %v86_v15  }
  0x16   :  { %118 = vperm.xlu2 %158, %v90_v16  }
  0x68   :  { %v114_v26 = vpop.permute.xlu2 %113 }
  0x70   :  { %v119_v40 = vpop.permute.xlu2 %118 }
  0x7d   :  { %v104_v18 = vpop.permute.xlu1 %103 }
  0x7e   :  { %v94_v17 = vpop.permute.xlu0 %93 }
  0x85   :  { %v109_v28 = vpop.permute.xlu1 %108 }
  0x86   :  { %v70_v20 = vpop.f32.mrf.mxu1  ;;  %v99_v21 = vpop.permute.xlu0 %98 }
  0x87   :  { %v71_v22 = vadd.f32 %v159_v19, %v70_v20 }
  0x89   :  { %v67_v23 = vpop.f32.mrf.mxu0  ;;  %v122_v24 = vmul.f32 %v99_v21, %v71_v22 }
  0x8a   :  { %v68_v25 = vadd.f32 %v159_v19, %v67_v23 }
  0x8b   :  { %128 = vst.msk [vmem:[%s271_s4 + $0x8] sm:$0xff] %vm31_vm0, %v122_v24 }
  0x8c   :  { %v121_v27 = vmul.f32 %v94_v17, %v68_v25 }
  0x8d   :  { %v76_v29 = vpop.f32.mrf.mxu2  ;;  %v79_v30 = vpop.f32.mrf.mxu3 }
  0x8e   :  { %127 = vst.msk [vmem:[%s271_s4] sm:$0xff] %vm31_vm0, %v121_v27  ;;  %v77_v31 = vadd.f32 %v159_v19, %v76_v29  ;;  %v80_v32 = vadd.f32 %v159_v19, %v79_v30  ;;  %v73_v33 = vpop.f32.mrf.mxu1 }
  0x8f   :  { %v74_v34 = vadd.f32 %v159_v19, %v73_v33 }
  0x90   :  { %v125_v35 = vmul.f32 %v114_v26, %v80_v32  ;;  %v124_v36 = vmul.f32 %v109_v28, %v77_v31 }
  0x91   :  { %v123_v37 = vmul.f32 %v104_v18, %v74_v34 }
  0x92   :  { %131 = vst.msk [vmem:[%s271_s4 + $0x20] sm:$0xff] %vm31_vm0, %v125_v35 }
  0x93   :  { %130 = vst.msk [vmem:[%s271_s4 + $0x18] sm:$0xff] %vm31_vm0, %v124_v36 }
  0x94   :  { %129 = vst.msk [vmem:[%s271_s4 + $0x10] sm:$0xff] %vm31_vm0, %v123_v37 }
  0x95   :  { %v82_v38 = vpop.f32.mrf.mxu3 }
  0x96   :  { %v83_v39 = vadd.f32 %v159_v19, %v82_v38 }
  0x98   :  { %v126_v41 = vmul.f32 %v119_v40, %v83_v39 }
  0x9a   :  { %132 = vst.msk [vmem:[%s271_s4 + $0x28] sm:$0xff] %vm31_vm0, %v126_v41 }

</bundles_post_ra>
